<compile_context>
chip_gen: v6e
topology: v6e:2x2x1
jax: 0.10.0
libtpu: 0.0.40
codegen_flags: <defaults>
</compile_context>

<pallas_src>
import jax
import jax.numpy as jnp
from jax import lax
from jax.experimental import pallas as pl
from jax.experimental.pallas import tpu as pltpu


_LANE = 128
_SUBLANE = 8
_DMA_WINDOW = 8  # max in-flight row DMAs on the HBM-gather path


def _round_up(x: int, m: int) -> int:
    return ((x + m - 1) // m) * m


def _vmem_capacity_bytes() -> int:
    """Physical VMEM of the current chip (conservative fallback)."""
    try:
        return int(pltpu.get_tpu_info().vmem_capacity_bytes)
    except Exception:
        return 64 << 20  # v7x per-TensorCore size; safe lower bound


# ---------------------------------------------------------------------------
# Fast path: weight resident in VMEM, lookups are on-chip dynamic row reads.
# ---------------------------------------------------------------------------
def _vmem_gather_kernel(idx_ref, w_ref, o_ref):
    batch = o_ref.shape[0]

    def body(b, carry):
        o_ref[pl.ds(b, 1), :] = w_ref[pl.ds(idx_ref[b], 1), :]
        return carry

    lax.fori_loop(0, batch, body, 0, unroll=(batch <= 16))


# ---------------------------------------------------------------------------
# Large-table path: weight and output stay in HBM; gather rows HBM->HBM with a
# bounded ring of in-flight DMAs (no VMEM staging, no block write-back).
# ---------------------------------------------------------------------------
def _hbm_gather_kernel(idx_ref, w_hbm, o_hbm, sems):
    batch = o_hbm.shape[0]

    def start_copy(b, row):
        pltpu.make_async_copy(
            w_hbm.at[pl.ds(row, 1), :],
            o_hbm.at[pl.ds(b, 1), :],
            sems.at[b % _DMA_WINDOW],
        ).start()

    def wait_copy(b):
        pltpu.make_async_copy(
            w_hbm.at[pl.ds(0, 1), :],  # shape-only; wait is on the semaphore
            o_hbm.at[pl.ds(b, 1), :],
            sems.at[b % _DMA_WINDOW],
        ).wait()

    # Prime up to WINDOW copies (static unroll; all index reads before waits).
    for b in range(min(_DMA_WINDOW, batch)):
        start_copy(b, idx_ref[b])

    def body(b, carry):
        nxt = b + _DMA_WINDOW
        # Read the next index from SMEM *before* the wait (.wait() breaks
        # SMEM store->load forwarding).
        row_next = idx_ref[jnp.minimum(nxt, batch - 1)]
        wait_copy(b)  # frees semaphore slot b % WINDOW before it is reused

        @pl.when(nxt < batch)
        def _():
            start_copy(nxt, row_next)

        return carry

    lax.fori_loop(0, batch, body, 0)


# ---------------------------------------------------------------------------
# Host-side wrappers
# ---------------------------------------------------------------------------
def _pad_weight(weight_t: jax.Array) -> jax.Array:
    s, a = weight_t.shape
    s_pad = _round_up(s, _SUBLANE)
    a_pad = _round_up(a, _LANE)
    if (s_pad, a_pad) == (s, a):
        return weight_t
    return jnp.zeros((s_pad, a_pad), weight_t.dtype).at[:s, :a].set(weight_t)


def _call_vmem(idx: jax.Array, w_pad: jax.Array) -> jax.Array:
    batch = idx.shape[0]
    s_pad, a_pad = w_pad.shape
    itemsize = w_pad.dtype.itemsize
    w_bytes = s_pad * a_pad * itemsize
    out_bytes = batch * a_pad * itemsize
    # Weight + output blocks are double-buffered by the pipeline; add headroom.
    vmem_limit = min(_vmem_capacity_bytes(),
                     2 * w_bytes + 2 * out_bytes + (8 << 20))
    return pl.pallas_call(
        _vmem_gather_kernel,
        out_shape=jax.ShapeDtypeStruct((batch, a_pad), w_pad.dtype),
        grid_spec=pltpu.PrefetchScalarGridSpec(
            num_scalar_prefetch=1,            # state indices land in SMEM
            grid=(1,),
            in_specs=[pl.BlockSpec((s_pad, a_pad), lambda i, idx_ref: (0, 0))],
            out_specs=pl.BlockSpec((batch, a_pad), lambda i, idx_ref: (0, 0)),
        ),
        compiler_params=pltpu.CompilerParams(
            dimension_semantics=("arbitrary",),
            vmem_limit_bytes=int(vmem_limit),
        ),
    )(idx, w_pad)


def _call_hbm(idx: jax.Array, w_pad: jax.Array) -> jax.Array:
    batch = idx.shape[0]
    _, a_pad = w_pad.shape
    return pl.pallas_call(
        _hbm_gather_kernel,
        out_shape=jax.ShapeDtypeStruct((batch, a_pad), w_pad.dtype),
        grid_spec=pltpu.PrefetchScalarGridSpec(
            num_scalar_prefetch=1,
            grid=(1,),
            in_specs=[pl.BlockSpec(memory_space=pl.ANY)],   # weight stays in HBM
            out_specs=pl.BlockSpec(memory_space=pl.ANY),    # output stays in HBM
            scratch_shapes=[pltpu.SemaphoreType.DMA((_DMA_WINDOW,))],
        ),
        compiler_params=pltpu.CompilerParams(
            dimension_semantics=("arbitrary",),
        ),
    )(idx, w_pad)


def linear_approx_q_batched(state_idx0: jax.Array, weight_t: jax.Array,
                            *, force_path: str | None = None) -> jax.Array:
    """Q[b, :] = one_hot(state_idx0[b]) @ weight_t == weight_t[state_idx0[b], :].

    state_idx0: (B,) integer, 0-indexed states (clamped into [0, S) here; out
                of range states return the boundary row rather than faulting).
    weight_t:   (S, A) float — transpose of the nn.Linear weight.
    force_path: None | "vmem" | "hbm"  (testing hook; None picks by table size)
    """
    (batch,) = state_idx0.shape
    num_states, num_actions = weight_t.shape
    idx = jnp.clip(state_idx0.astype(jnp.int32), 0, num_states - 1)
    w_pad = _pad_weight(weight_t)
    w_bytes = w_pad.shape[0] * w_pad.shape[1] * w_pad.dtype.itemsize

    use_vmem = w_bytes <= int(0.4 * _vmem_capacity_bytes())
    if force_path == "vmem":
        use_vmem = True
    elif force_path == "hbm":
        use_vmem = False

    q_pad = _call_vmem(idx, w_pad) if use_vmem else _call_hbm(idx, w_pad)
    return q_pad[:, :num_actions]


def linear_approx_forward(state: int, weight_t: jax.Array) -> jax.Array:
    """Module forward: single 1-indexed state -> (1, num_actions) Q values.

    NOTE: for a single 16-byte lookup the kernel launch dominates; in a real
    training loop prefer the batched call (or a plain XLA gather
    weight_t[state - 1][None]).  The Pallas path is kept since this kernel is
    the forward being demonstrated.
    """
    idx0 = jnp.asarray([state - 1], dtype=jnp.int32)
    return linear_approx_q_batched(idx0, weight_t)


# TODO(synk): select_action (epsilon-greedy with NumPy RNG + Python step
# counter) is host-side control flow, not a kernel; intentionally not ported.


if __name__ == "__main__":
    # Small, deterministic config (args.num_states / args.num_actions analogue).
    num_states = 16
    num_actions = 4

    key = jax.random.PRNGKey(0)
    # nn.Linear default init U(-1/sqrt(in), 1/sqrt(in)); PyTorch weight is
    # (A, S) — store it transposed as (S, A) so Q(state) is row (state - 1).
    bound = 1.0 / jnp.sqrt(jnp.float32(num_states))
    weight = jax.random.uniform(
        key, (num_actions, num_states), minval=-bound, maxval=bound,
        dtype=jnp.float32)
    weight_t = jnp.asarray(weight.T)  # (num_states, num_actions)

    # --- single-state forward (matches the PyTorch module's forward) ---
    state = 3  # 1-indexed, as in the PyTorch module
    q_vec = jax.block_until_ready(linear_approx_forward(state, weight_t))
    one_hot = jax.nn.one_hot(state - 1, num_states, dtype=jnp.float32)[None, :]
    q_ref = one_hot @ weight_t
    assert q_vec.shape == (1, num_actions)
    assert jnp.allclose(q_vec, q_ref, atol=1e-6), "single-state mismatch"

    # --- batched lookups, VMEM-resident fast path ---
    states_1idx = jnp.array([1, 3, 5, 16, 2, 7, 11, 8], dtype=jnp.int32)
    idx0 = states_1idx - 1
    q_batch = jax.block_until_ready(
        linear_approx_q_batched(idx0, weight_t, force_path="vmem"))
    assert q_batch.shape == (states_1idx.shape[0], num_actions)
    assert jnp.allclose(q_batch, weight_t[idx0, :], atol=1e-6), "vmem path mismatch"

    # --- batched lookups, HBM->HBM gather path (B > DMA window) ---
    idx_big = jnp.arange(20, dtype=jnp.int32) % num_states
    q_big = jax.block_until_ready(
        linear_approx_q_batched(idx_big, weight_t, force_path="hbm"))
    assert q_big.shape == (20, num_actions)
    assert jnp.allclose(q_big, weight_t[idx_big, :], atol=1e-6), "hbm path mismatch"

    print("KERNEL_OK")
</pallas_src>

<mosaic_0001>
module attributes {stable_mosaic.version = 11 : i64} {
  func.func @_vmem_gather_kernel(%arg0: i32, %arg1: memref<1xi32, #tpu.memory_space<smem>>, %arg2: memref<16x128xf32, #tpu.memory_space<vmem>>, %arg3: memref<1x128xf32, #tpu.memory_space<vmem>>) attributes {dimension_semantics = [#tpu.dimension_semantics<arbitrary>], iteration_bounds = array<i64: 1>, scalar_prefetch = 1 : i64, scratch_operands = 0 : i64, tpu.core_type = #tpu.core_type<tc>, window_params = [{pipeline_mode = #tpu.pipeline_mode<synchronous>, transform_indices = @transform_0, window_bounds = array<i64: 16, 128>}, {pipeline_mode = #tpu.pipeline_mode<synchronous>, transform_indices = @transform_1, window_bounds = array<i64: 1, 128>}]} {
    %c0_i32 = arith.constant 0 : i32
    %0 = arith.index_cast %c0_i32 : i32 to index
    %1 = memref.load %arg1[%0] : memref<1xi32, #tpu.memory_space<smem>>
    %2 = arith.index_cast %1 : i32 to index
    %c0 = arith.constant 0 : index
    %3 = vector.load %arg2[%2, %c0] : memref<16x128xf32, #tpu.memory_space<vmem>>, vector<1x128xf32>
    %4 = arith.index_cast %c0_i32 : i32 to index
    %c0_0 = arith.constant 0 : index
    %5 = vector.load %arg3[%4, %c0_0] : memref<1x128xf32, #tpu.memory_space<vmem>>, vector<1x128xf32>
    tpu.vector_store %arg3[%4, %c0_0], %3 {strides = array<i32>} : memref<1x128xf32, #tpu.memory_space<vmem>>, vector<1x128xf32>,
    %c1_i32 = arith.constant 1 : i32
    return
  }
  func.func @transform_0(%arg0: i32, %arg1: memref<1xi32, #tpu.memory_space<smem>>) -> (i32, i32) {
    %c0_i32 = arith.constant 0 : i32
    %c0_i32_0 = arith.constant 0 : i32
    %c0_i32_1 = arith.constant 0 : i32
    return %c0_i32, %c0_i32_0 : i32, i32
  }
  func.func @transform_1(%arg0: i32, %arg1: memref<1xi32, #tpu.memory_space<smem>>) -> (i32, i32) {
    %c0_i32 = arith.constant 0 : i32
    %c0_i32_0 = arith.constant 0 : i32
    %c0_i32_1 = arith.constant 0 : i32
    return %c0_i32, %c0_i32_0 : i32, i32
  }
}

</mosaic_0001>

<bundles_post_ra>
// kernel: tpu_custom_call.1
= control target key start
LH: loop header
LB: loop body
LE: loop exit
PB: predicated region body
PF: predicated region fallthrough
CT: control target
= control target key end

     0   :  { %8 = vsyncpa [#allocation5], 0  ;;  %s121_s0 = inlined_call_operand.<no memory space> [shape: s32[1], index: 0, kind: input, shape index: {}]   ;;  %s122_s1 = inlined_call_operand.hbm [shape: f32[16,128], index: 1, kind: input, shape index: {}]   ;;  %s123_s2 = inlined_call_operand.hbm [shape: f32[1,128], index: 2, kind: output, shape index: {}]  }
   0x1   :  { %9 = vsyncpa [#allocation6], 0  ;;  %s93_s9 = smov [#allocation4]  }
   0x2   :  { %s15_s10 = sshll.u32 %s93_s9, 4  ;;  %s16_s10 = int_to_ptr.vmem [resolvable:$true] %s15_s10 }
   0x3   :  { %s57_s11 = scalar_lea.vmem %s16_s10, 256  ;;  %p62_p1 = scmp.lt.s32.totalorder %s16_s10, %s16_s10 }
   0x4   :  { %p58_p0 = scmp.ne.s32.totalorder %s16_s10, %s57_s11  ;;  %p63_p2 = scmp.lt.s32.totalorder %s57_s11, %s57_s11 }
   0x6   :  { %p64_p3 = por %p63_p2, %p62_p1 }
   0x8   :  { %p65_p4 = pnand %p64_p3, %p58_p0 }
   0xa   :  { %68 = shalt.err (!%p65_p4)
}
   0xb   :  { %s94_s12 = smov 128   ;;  %s95_s13 = smov 8  }
   0xc   :  { %21 = dma.hbm_to_vmem [thread:$0]  %s122_s1, 256, %s16_s10, [#allocation5], %s94_s12, %s94_s12, %s95_s13  }
   0xd   :  { %89 = dma.done.wait [#allocation5], 256  }
   0xe   :  { %90 = vsyncadd [#allocation5], 4294967040  ;;  %s96_s16 = smov [#allocation7]   ;;  %s26_s20 = scalar_lea.vmem [#allocation4], %s121_s0 }
   0xf   :  { %s35_s17 = sshll.u32 %s96_s16, 4  ;;  %v27_v0 = vld [vmem:[%s26_s20] sm:$0x1]  ;;  %s36_s17 = int_to_ptr.vmem [resolvable:$true] %s35_s17 }
  0x10   :  { %28 = vst [vmem:[#allocation7] sm:$0x1] %v27_v0  ;;  %s69_s21 = scalar_lea.vmem %s36_s17, 16  ;;  %s73_s22 = scalar_lea.vmem %s36_s17, 32 }
  0x11   :  { %p70_p5 = scmp.ne.s32.totalorder %s36_s17, %s69_s21  ;;  %p74_p6 = scmp.lt.s32.totalorder %s36_s17, %s36_s17 }
  0x12   :  { %p75_p7 = scmp.lt.s32.totalorder %s73_s22, %s69_s21 }
  0x14   :  { %p76_p8 = por %p75_p7, %p74_p6 }
  0x16   :  { %p77_p9 = pnand %p76_p8, %p70_p5 }
  0x18   :  { %80 = shalt.err (!%p77_p9)
}
  0x19   :  { %38 = dma.vmem_to_hbm [thread:$0]  %s36_s17, 16, %s123_s2, [#allocation6]  }
  0x1a   :  { %91 = dma.done.wait [#allocation6], 16  }
  0x1b   :  { %92 = vsyncadd [#allocation6], 4294967280 }
  0x1c   :  { %42 = vsyncpa [#allocation5], 1 }
  0x1d   :  { %43 = vsyncpa [#allocation6], 1 }

</bundles_post_ra>
